<compile_context>
chip_gen: v5e
topology: v5e:2x2
jax: 0.10.0
libtpu: 0.0.40
codegen_flags: <defaults>
</compile_context>

<pallas_src>
import jax
import jax.numpy as jnp
from jax.experimental import pallas as pl
from jax.experimental.pallas import tpu as pltpu


def _pick_batch_tile(batch, split, h, w, itemsize, budget_bytes=8 * 1024 * 1024):
    """Largest batch tile that (a) divides both halves of the batch, so a block
    is never part-blend / part-pass-through, and (b) keeps the double-buffered
    in/out blocks plus the padded scratch inside a VMEM budget."""
    per_image = (2 + 2) * 3 * h * w * itemsize + 3 * (h + 2) * (w + 2) * 4
    cap = int(max(1, min(batch, budget_bytes // max(per_image, 1))))
    for bt in range(cap, 0, -1):
        if batch % bt == 0 and split % bt == 0:
            return bt
    return 1


def blend_gradient(x, alpha):
    """x: [B, 3, H, W]; alpha: scalar in [0.3, 1]. Matches BlendGradient.forward."""
    x = jnp.asarray(x)
    B, C, H, W = x.shape
    assert C == 3, "BlendGradient expects RGB (3-channel) input"
    split = B // 2
    alpha_arr = jnp.asarray(alpha, jnp.float32).reshape((1,))

    Bt = _pick_batch_tile(B, split, H, W, x.dtype.itemsize)
    num_blocks = B // Bt
    blend_blocks = split // Bt          # grid steps [0, blend_blocks) are blended

    # TODO(synk): for very large H/W, tile H with a 1-row halo (manual
    # make_async_copy of th+2 rows) so VMEM stays bounded; full-image blocks
    # are fine at the small spatial sizes this module is used with.

    def kernel(alpha_ref, x_ref, o_ref, pad_ref):
        # x_ref / o_ref: (Bt, 3, H, W);  pad_ref: (Bt, 3, H+2, W+2) f32 scratch.

        @pl.when(pl.program_id(0) < blend_blocks)
        def _blend():
            xf = x_ref[...].astype(jnp.float32)
            # In-kernel zero padding (== Conv2d padding=1): zero the scratch,
            # then write the unpadded block into its interior.
            pad_ref[...] = jnp.zeros((Bt, 3, H + 2, W + 2), jnp.float32)
            pad_ref[:, :, 1:H + 1, 1:W + 1] = xf

            a = alpha_ref[0]
            one_minus_a = 1.0 - a

            g_sum = jnp.zeros((Bt, 1, H, W), jnp.float32)
            for c in range(3):                    # one channel at a time -> fewer live vregs
                ch = pad_ref[:, c:c + 1, :, :]    # (Bt, 1, H+2, W+2)

                def tap(dy, dx):
                    return ch[:, :, dy:dy + H, dx:dx + W]

                # Corner taps are shared between the Sobel-x and Sobel-y sums.
                t00, t02 = tap(0, 0), tap(0, 2)
                t20, t22 = tap(2, 0), tap(2, 2)
                # Sobel-x (cross-correlation): [[1,0,-1],[2,0,-2],[1,0,-1]]
                gx = (t00 - t02) + 2.0 * (tap(1, 0) - tap(1, 2)) + (t20 - t22)
                # Sobel-y: [[1,2,1],[0,0,0],[-1,-2,-1]]
                gy = (t00 - t20) + 2.0 * (tap(0, 1) - tap(2, 1)) + (t02 - t22)
                g_sum = g_sum + jnp.sqrt(gx * gx + gy * gy)

            g = g_sum * (1.0 / 3.0)               # averaged gradient magnitude, (Bt,1,H,W)
            o_ref[...] = (a * xf + one_minus_a * g).astype(o_ref.dtype)

        @pl.when(pl.program_id(0) >= blend_blocks)
        def _passthrough():
            # Second half of the batch: pure copy, no Sobel / blend work.
            o_ref[...] = x_ref[...]

    out = pl.pallas_call(
        kernel,
        out_shape=jax.ShapeDtypeStruct((B, 3, H, W), x.dtype),
        grid_spec=pltpu.PrefetchScalarGridSpec(
            num_scalar_prefetch=0,
            grid=(num_blocks,),
            in_specs=[
                pl.BlockSpec(memory_space=pltpu.SMEM),                  # alpha (1,)
                pl.BlockSpec((Bt, 3, H, W), lambda i: (i, 0, 0, 0)),    # x, unpadded
            ],
            out_specs=pl.BlockSpec((Bt, 3, H, W), lambda i: (i, 0, 0, 0)),
            scratch_shapes=[pltpu.VMEM((Bt, 3, H + 2, W + 2), jnp.float32)],
        ),
        compiler_params=pltpu.CompilerParams(
            dimension_semantics=("parallel",),     # batch steps are independent (v7x: 2 TCs)
            vmem_limit_bytes=32 * 1024 * 1024,
        ),
    )(alpha_arr, x)

    # PyTorch forward ends with .squeeze(0) -- only does something when B == 1.
    if B == 1:
        out = jnp.squeeze(out, axis=0)
    return out


def _reference(x, alpha):
    """Pure-JAX reference of BlendGradient.forward (correctness check only)."""
    B, C, H, W = x.shape
    split = B // 2
    xp = jnp.pad(x.astype(jnp.float32), ((0, 0), (0, 0), (1, 1), (1, 1)))

    def tap(dy, dx):
        return xp[:, :, dy:dy + H, dx:dx + W]

    gx = (tap(0, 0) - tap(0, 2) + 2.0 * (tap(1, 0) - tap(1, 2))
          + tap(2, 0) - tap(2, 2))
    gy = (tap(0, 0) + 2.0 * tap(0, 1) + tap(0, 2)
          - tap(2, 0) - 2.0 * tap(2, 1) - tap(2, 2))
    g = jnp.mean(jnp.sqrt(gx * gx + gy * gy), axis=1, keepdims=True)
    a = jnp.asarray(alpha, jnp.float32)
    blend = a * x[:split].astype(jnp.float32) + (1.0 - a) * g[:split]
    out = jnp.concatenate([blend.astype(x.dtype), x[split:]], axis=0)
    if B == 1:
        out = jnp.squeeze(out, axis=0)
    return out


if __name__ == "__main__":
    key = jax.random.PRNGKey(0)
    kx, ka = jax.random.split(key)

    B, C, H, W = 2, 3, 16, 16
    x = jax.random.uniform(kx, (B, C, H, W), dtype=jnp.float32)

    # alpha = (alpha_range[0] - alpha_range[1]) * rand + alpha_range[1],
    # alpha_range = [0.3, 1.0]  (deterministic via PRNGKey instead of torch.rand)
    u = jax.random.uniform(ka, (), dtype=jnp.float32)
    alpha = (0.3 - 1.0) * u + 1.0

    out = blend_gradient(x, alpha)
    jax.block_until_ready(out)
    assert out.shape == (B, C, H, W)

    ref = _reference(x, alpha)
    assert jnp.allclose(out, ref, atol=1e-4, rtol=1e-4), "mismatch vs. JAX reference"
    print("KERNEL_OK")
</pallas_src>

<mosaic_0001>
module attributes {stable_mosaic.version = 11 : i64} {
  func.func @kernel(%arg0: i32, %arg1: memref<1xf32, #tpu.memory_space<smem>>, %arg2: memref<1x3x16x16xf32, #tpu.memory_space<vmem>>, %arg3: memref<1x3x16x16xf32, #tpu.memory_space<vmem>>, %arg4: memref<1x3x18x18xf32, #tpu.memory_space<vmem>>) attributes {dimension_semantics = [#tpu.dimension_semantics<parallel>], iteration_bounds = array<i64: 2>, scalar_prefetch = 0 : i64, scratch_operands = 1 : i64, tpu.core_type = #tpu.core_type<tc>, window_params = [{transform_indices = @transform_0, window_bounds = array<i64: 1>}, {transform_indices = @transform_1, window_bounds = array<i64: 1, 3, 16, 16>}, {transform_indices = @transform_2, window_bounds = array<i64: 1, 3, 16, 16>}]} {
    %c1_i32 = arith.constant 1 : i32
    %0 = arith.cmpi slt, %arg0, %c1_i32 : i32
    %1 = arith.extui %0 : i1 to i32
    %c0_i32 = arith.constant 0 : i32
    %2 = arith.cmpi ne, %1, %c0_i32 : i32
    scf.if %2 {
      %c0 = arith.constant 0 : index
      %c0_2 = arith.constant 0 : index
      %c0_3 = arith.constant 0 : index
      %c0_4 = arith.constant 0 : index
      %6 = vector.load %arg2[%c0, %c0_2, %c0_3, %c0_4] : memref<1x3x16x16xf32, #tpu.memory_space<vmem>>, vector<1x3x16x16xf32>
      %cst = arith.constant 0.000000e+00 : f32
      %7 = vector.broadcast %cst : f32 to vector<1x3x18x18xf32>
      %c0_5 = arith.constant 0 : index
      %c0_6 = arith.constant 0 : index
      %c0_7 = arith.constant 0 : index
      %c0_8 = arith.constant 0 : index
      %8 = vector.load %arg4[%c0_5, %c0_6, %c0_7, %c0_8] : memref<1x3x18x18xf32, #tpu.memory_space<vmem>>, vector<1x3x18x18xf32>
      tpu.vector_store %arg4[%c0_5, %c0_6, %c0_7, %c0_8], %7 {strides = array<i32>} : memref<1x3x18x18xf32, #tpu.memory_space<vmem>>, vector<1x3x18x18xf32>,
      %c0_9 = arith.constant 0 : index
      %c0_10 = arith.constant 0 : index
      %c1 = arith.constant 1 : index
      %c1_11 = arith.constant 1 : index
      %9 = vector.load %arg4[%c0_9, %c0_10, %c1, %c1_11] : memref<1x3x18x18xf32, #tpu.memory_space<vmem>>, vector<1x3x16x16xf32>
      tpu.vector_store %arg4[%c0_9, %c0_10, %c1, %c1_11], %6 {strides = array<i32>} : memref<1x3x18x18xf32, #tpu.memory_space<vmem>>, vector<1x3x16x16xf32>,
      %c0_12 = arith.constant 0 : index
      %10 = memref.load %arg1[%c0_12] : memref<1xf32, #tpu.memory_space<smem>>
      %cst_13 = arith.constant 1.000000e+00 : f32
      %11 = arith.subf %cst_13, %10 : f32
      %cst_14 = arith.constant 0.000000e+00 : f32
      %12 = vector.broadcast %cst_14 : f32 to vector<1x1x16x16xf32>
      %c0_15 = arith.constant 0 : index
      %c0_16 = arith.constant 0 : index
      %c0_17 = arith.constant 0 : index
      %c0_18 = arith.constant 0 : index
      %13 = vector.load %arg4[%c0_15, %c0_16, %c0_17, %c0_18] : memref<1x3x18x18xf32, #tpu.memory_space<vmem>>, vector<1x1x18x18xf32>
      %14 = vector.extract_strided_slice %13 {offsets = [0, 0, 0, 0], sizes = [1, 1, 16, 16], strides = [1, 1, 1, 1]} : vector<1x1x18x18xf32> to vector<1x1x16x16xf32>
      %15 = vector.extract_strided_slice %13 {offsets = [0, 0, 0, 2], sizes = [1, 1, 16, 16], strides = [1, 1, 1, 1]} : vector<1x1x18x18xf32> to vector<1x1x16x16xf32>
      %16 = vector.extract_strided_slice %13 {offsets = [0, 0, 2, 0], sizes = [1, 1, 16, 16], strides = [1, 1, 1, 1]} : vector<1x1x18x18xf32> to vector<1x1x16x16xf32>
      %17 = vector.extract_strided_slice %13 {offsets = [0, 0, 2, 2], sizes = [1, 1, 16, 16], strides = [1, 1, 1, 1]} : vector<1x1x18x18xf32> to vector<1x1x16x16xf32>
      %18 = arith.subf %14, %15 : vector<1x1x16x16xf32>
      %19 = vector.extract_strided_slice %13 {offsets = [0, 0, 1, 0], sizes = [1, 1, 16, 16], strides = [1, 1, 1, 1]} : vector<1x1x18x18xf32> to vector<1x1x16x16xf32>
      %20 = vector.extract_strided_slice %13 {offsets = [0, 0, 1, 2], sizes = [1, 1, 16, 16], strides = [1, 1, 1, 1]} : vector<1x1x18x18xf32> to vector<1x1x16x16xf32>
      %21 = arith.subf %19, %20 : vector<1x1x16x16xf32>
      %cst_19 = arith.constant 2.000000e+00 : f32
      %22 = vector.broadcast %cst_19 : f32 to vector<1x1x16x16xf32>
      %23 = arith.mulf %22, %21 : vector<1x1x16x16xf32>
      %24 = arith.addf %18, %23 : vector<1x1x16x16xf32>
      %25 = arith.subf %16, %17 : vector<1x1x16x16xf32>
      %26 = arith.addf %24, %25 : vector<1x1x16x16xf32>
      %27 = arith.subf %14, %16 : vector<1x1x16x16xf32>
      %28 = vector.extract_strided_slice %13 {offsets = [0, 0, 0, 1], sizes = [1, 1, 16, 16], strides = [1, 1, 1, 1]} : vector<1x1x18x18xf32> to vector<1x1x16x16xf32>
      %29 = vector.extract_strided_slice %13 {offsets = [0, 0, 2, 1], sizes = [1, 1, 16, 16], strides = [1, 1, 1, 1]} : vector<1x1x18x18xf32> to vector<1x1x16x16xf32>
      %30 = arith.subf %28, %29 : vector<1x1x16x16xf32>
      %cst_20 = arith.constant 2.000000e+00 : f32
      %31 = vector.broadcast %cst_20 : f32 to vector<1x1x16x16xf32>
      %32 = arith.mulf %31, %30 : vector<1x1x16x16xf32>
      %33 = arith.addf %27, %32 : vector<1x1x16x16xf32>
      %34 = arith.subf %15, %17 : vector<1x1x16x16xf32>
      %35 = arith.addf %33, %34 : vector<1x1x16x16xf32>
      %36 = arith.mulf %26, %26 : vector<1x1x16x16xf32>
      %37 = arith.mulf %35, %35 : vector<1x1x16x16xf32>
      %38 = arith.addf %36, %37 : vector<1x1x16x16xf32>
      %39 = math.sqrt %38 : vector<1x1x16x16xf32>
      %40 = arith.addf %12, %39 : vector<1x1x16x16xf32>
      %c0_21 = arith.constant 0 : index
      %c1_22 = arith.constant 1 : index
      %c0_23 = arith.constant 0 : index
      %c0_24 = arith.constant 0 : index
      %41 = vector.load %arg4[%c0_21, %c1_22, %c0_23, %c0_24] : memref<1x3x18x18xf32, #tpu.memory_space<vmem>>, vector<1x1x18x18xf32>
      %42 = vector.extract_strided_slice %41 {offsets = [0, 0, 0, 0], sizes = [1, 1, 16, 16], strides = [1, 1, 1, 1]} : vector<1x1x18x18xf32> to vector<1x1x16x16xf32>
      %43 = vector.extract_strided_slice %41 {offsets = [0, 0, 0, 2], sizes = [1, 1, 16, 16], strides = [1, 1, 1, 1]} : vector<1x1x18x18xf32> to vector<1x1x16x16xf32>
      %44 = vector.extract_strided_slice %41 {offsets = [0, 0, 2, 0], sizes = [1, 1, 16, 16], strides = [1, 1, 1, 1]} : vector<1x1x18x18xf32> to vector<1x1x16x16xf32>
      %45 = vector.extract_strided_slice %41 {offsets = [0, 0, 2, 2], sizes = [1, 1, 16, 16], strides = [1, 1, 1, 1]} : vector<1x1x18x18xf32> to vector<1x1x16x16xf32>
      %46 = arith.subf %42, %43 : vector<1x1x16x16xf32>
      %47 = vector.extract_strided_slice %41 {offsets = [0, 0, 1, 0], sizes = [1, 1, 16, 16], strides = [1, 1, 1, 1]} : vector<1x1x18x18xf32> to vector<1x1x16x16xf32>
      %48 = vector.extract_strided_slice %41 {offsets = [0, 0, 1, 2], sizes = [1, 1, 16, 16], strides = [1, 1, 1, 1]} : vector<1x1x18x18xf32> to vector<1x1x16x16xf32>
      %49 = arith.subf %47, %48 : vector<1x1x16x16xf32>
      %cst_25 = arith.constant 2.000000e+00 : f32
      %50 = vector.broadcast %cst_25 : f32 to vector<1x1x16x16xf32>
      %51 = arith.mulf %50, %49 : vector<1x1x16x16xf32>
      %52 = arith.addf %46, %51 : vector<1x1x16x16xf32>
      %53 = arith.subf %44, %45 : vector<1x1x16x16xf32>
      %54 = arith.addf %52, %53 : vector<1x1x16x16xf32>
      %55 = arith.subf %42, %44 : vector<1x1x16x16xf32>
      %56 = vector.extract_strided_slice %41 {offsets = [0, 0, 0, 1], sizes = [1, 1, 16, 16], strides = [1, 1, 1, 1]} : vector<1x1x18x18xf32> to vector<1x1x16x16xf32>
      %57 = vector.extract_strided_slice %41 {offsets = [0, 0, 2, 1], sizes = [1, 1, 16, 16], strides = [1, 1, 1, 1]} : vector<1x1x18x18xf32> to vector<1x1x16x16xf32>
      %58 = arith.subf %56, %57 : vector<1x1x16x16xf32>
      %cst_26 = arith.constant 2.000000e+00 : f32
      %59 = vector.broadcast %cst_26 : f32 to vector<1x1x16x16xf32>
      %60 = arith.mulf %59, %58 : vector<1x1x16x16xf32>
      %61 = arith.addf %55, %60 : vector<1x1x16x16xf32>
      %62 = arith.subf %43, %45 : vector<1x1x16x16xf32>
      %63 = arith.addf %61, %62 : vector<1x1x16x16xf32>
      %64 = arith.mulf %54, %54 : vector<1x1x16x16xf32>
      %65 = arith.mulf %63, %63 : vector<1x1x16x16xf32>
      %66 = arith.addf %64, %65 : vector<1x1x16x16xf32>
      %67 = math.sqrt %66 : vector<1x1x16x16xf32>
      %68 = arith.addf %40, %67 : vector<1x1x16x16xf32>
      %c0_27 = arith.constant 0 : index
      %c2 = arith.constant 2 : index
      %c0_28 = arith.constant 0 : index
      %c0_29 = arith.constant 0 : index
      %69 = vector.load %arg4[%c0_27, %c2, %c0_28, %c0_29] : memref<1x3x18x18xf32, #tpu.memory_space<vmem>>, vector<1x1x18x18xf32>
      %70 = vector.extract_strided_slice %69 {offsets = [0, 0, 0, 0], sizes = [1, 1, 16, 16], strides = [1, 1, 1, 1]} : vector<1x1x18x18xf32> to vector<1x1x16x16xf32>
      %71 = vector.extract_strided_slice %69 {offsets = [0, 0, 0, 2], sizes = [1, 1, 16, 16], strides = [1, 1, 1, 1]} : vector<1x1x18x18xf32> to vector<1x1x16x16xf32>
      %72 = vector.extract_strided_slice %69 {offsets = [0, 0, 2, 0], sizes = [1, 1, 16, 16], strides = [1, 1, 1, 1]} : vector<1x1x18x18xf32> to vector<1x1x16x16xf32>
      %73 = vector.extract_strided_slice %69 {offsets = [0, 0, 2, 2], sizes = [1, 1, 16, 16], strides = [1, 1, 1, 1]} : vector<1x1x18x18xf32> to vector<1x1x16x16xf32>
      %74 = arith.subf %70, %71 : vector<1x1x16x16xf32>
      %75 = vector.extract_strided_slice %69 {offsets = [0, 0, 1, 0], sizes = [1, 1, 16, 16], strides = [1, 1, 1, 1]} : vector<1x1x18x18xf32> to vector<1x1x16x16xf32>
      %76 = vector.extract_strided_slice %69 {offsets = [0, 0, 1, 2], sizes = [1, 1, 16, 16], strides = [1, 1, 1, 1]} : vector<1x1x18x18xf32> to vector<1x1x16x16xf32>
      %77 = arith.subf %75, %76 : vector<1x1x16x16xf32>
      %cst_30 = arith.constant 2.000000e+00 : f32
      %78 = vector.broadcast %cst_30 : f32 to vector<1x1x16x16xf32>
      %79 = arith.mulf %78, %77 : vector<1x1x16x16xf32>
      %80 = arith.addf %74, %79 : vector<1x1x16x16xf32>
      %81 = arith.subf %72, %73 : vector<1x1x16x16xf32>
      %82 = arith.addf %80, %81 : vector<1x1x16x16xf32>
      %83 = arith.subf %70, %72 : vector<1x1x16x16xf32>
      %84 = vector.extract_strided_slice %69 {offsets = [0, 0, 0, 1], sizes = [1, 1, 16, 16], strides = [1, 1, 1, 1]} : vector<1x1x18x18xf32> to vector<1x1x16x16xf32>
      %85 = vector.extract_strided_slice %69 {offsets = [0, 0, 2, 1], sizes = [1, 1, 16, 16], strides = [1, 1, 1, 1]} : vector<1x1x18x18xf32> to vector<1x1x16x16xf32>
      %86 = arith.subf %84, %85 : vector<1x1x16x16xf32>
      %cst_31 = arith.constant 2.000000e+00 : f32
      %87 = vector.broadcast %cst_31 : f32 to vector<1x1x16x16xf32>
      %88 = arith.mulf %87, %86 : vector<1x1x16x16xf32>
      %89 = arith.addf %83, %88 : vector<1x1x16x16xf32>
      %90 = arith.subf %71, %73 : vector<1x1x16x16xf32>
      %91 = arith.addf %89, %90 : vector<1x1x16x16xf32>
      %92 = arith.mulf %82, %82 : vector<1x1x16x16xf32>
      %93 = arith.mulf %91, %91 : vector<1x1x16x16xf32>
      %94 = arith.addf %92, %93 : vector<1x1x16x16xf32>
      %95 = math.sqrt %94 : vector<1x1x16x16xf32>
      %96 = arith.addf %68, %95 : vector<1x1x16x16xf32>
      %cst_32 = arith.constant 0.333333343 : f32
      %97 = vector.broadcast %cst_32 : f32 to vector<1x1x16x16xf32>
      %98 = arith.mulf %96, %97 : vector<1x1x16x16xf32>
      %99 = vector.broadcast %10 : f32 to vector<1x3x16x16xf32>
      %100 = arith.mulf %99, %6 : vector<1x3x16x16xf32>
      %101 = vector.broadcast %11 : f32 to vector<1x1x16x16xf32>
      %102 = arith.mulf %101, %98 : vector<1x1x16x16xf32>
      %103 = vector.broadcast %102 : vector<1x1x16x16xf32> to vector<1x3x16x16xf32>
      %104 = arith.addf %100, %103 : vector<1x3x16x16xf32>
      %c0_33 = arith.constant 0 : index
      %c0_34 = arith.constant 0 : index
      %c0_35 = arith.constant 0 : index
      %c0_36 = arith.constant 0 : index
      %105 = vector.load %arg3[%c0_33, %c0_34, %c0_35, %c0_36] : memref<1x3x16x16xf32, #tpu.memory_space<vmem>>, vector<1x3x16x16xf32>
      tpu.vector_store %arg3[%c0_33, %c0_34, %c0_35, %c0_36], %104 {strides = array<i32>} : memref<1x3x16x16xf32, #tpu.memory_space<vmem>>, vector<1x3x16x16xf32>,
    } else {
    }
    %c1_i32_0 = arith.constant 1 : i32
    %3 = arith.cmpi sge, %arg0, %c1_i32_0 : i32
    %4 = arith.extui %3 : i1 to i32
    %c0_i32_1 = arith.constant 0 : i32
    %5 = arith.cmpi ne, %4, %c0_i32_1 : i32
    scf.if %5 {
      %c0 = arith.constant 0 : index
      %c0_2 = arith.constant 0 : index
      %c0_3 = arith.constant 0 : index
      %c0_4 = arith.constant 0 : index
      %6 = vector.load %arg2[%c0, %c0_2, %c0_3, %c0_4] : memref<1x3x16x16xf32, #tpu.memory_space<vmem>>, vector<1x3x16x16xf32>
      %c0_5 = arith.constant 0 : index
      %c0_6 = arith.constant 0 : index
      %c0_7 = arith.constant 0 : index
      %c0_8 = arith.constant 0 : index
      %7 = vector.load %arg3[%c0_5, %c0_6, %c0_7, %c0_8] : memref<1x3x16x16xf32, #tpu.memory_space<vmem>>, vector<1x3x16x16xf32>
      tpu.vector_store %arg3[%c0_5, %c0_6, %c0_7, %c0_8], %6 {strides = array<i32>} : memref<1x3x16x16xf32, #tpu.memory_space<vmem>>, vector<1x3x16x16xf32>,
    } else {
    }
    return
  }
  func.func @transform_0(%arg0: i32) -> i32 {
    %c0_i32 = arith.constant 0 : i32
    %c0_i32_0 = arith.constant 0 : i32
    return %c0_i32 : i32
  }
  func.func @transform_1(%arg0: i32) -> (i32, i32, i32, i32) {
    %c0_i32 = arith.constant 0 : i32
    %c0_i32_0 = arith.constant 0 : i32
    %c0_i32_1 = arith.constant 0 : i32
    %c0_i32_2 = arith.constant 0 : i32
    return %arg0, %c0_i32, %c0_i32_0, %c0_i32_1 : i32, i32, i32, i32
  }
  func.func @transform_2(%arg0: i32) -> (i32, i32, i32, i32) {
    %c0_i32 = arith.constant 0 : i32
    %c0_i32_0 = arith.constant 0 : i32
    %c0_i32_1 = arith.constant 0 : i32
    %c0_i32_2 = arith.constant 0 : i32
    return %arg0, %c0_i32, %c0_i32_0, %c0_i32_1 : i32, i32, i32, i32
  }
}

</mosaic_0001>

<bundles_post_ra>
// kernel: tpu_custom_call.1
= control target key start
LH: loop header
LB: loop body
LE: loop exit
PB: predicated region body
PF: predicated region fallthrough
CT: control target
= control target key end

     0   :  { %s1232_s0 = inlined_call_operand.<no memory space> [shape: f32[1], index: 0, kind: input, shape index: {}]   ;;  %s1233_s1 = inlined_call_operand.hbm [shape: f32[2,3,16,16], index: 1, kind: input, shape index: {}]   ;;  %s1234_s2 = inlined_call_operand.hbm [shape: f32[2,3,16,16], index: 2, kind: output, shape index: {}]  }
   0x1   :  { %7 = sst [smem:[#allocation3]] %s1232_s0 }
   0x2   :  { %8 = vsyncpa [#allocation5], 0 }
   0x3   :  { %10 = vsyncpa [#allocation5 + $0x1], 0 }
   0x4   :  { %11 = vsyncpa [#allocation6], 0 }
   0x5   :  { %13 = vsyncpa [#allocation6 + $0x1], 0  ;;  %s882_s11 = smov 0   ;;  %s884_s12 = smov 0  }
   0x6   :  { %s886_s13 = smov 0   ;;  %s888_s14 = smov 0  }
   0x7 LB: > { %s903_s0 = sadd.s32 4294967295, %s854_s14   ;;  %s678_s15 = sadd.s32 4294967294, %s854_s14   ;;  %s854_s14 = sphi %s888_s14, %s1242_s14   ;;  %s850_s13 = sphi %s886_s13, %s1241_s13   ;;  %s846_s12 = sphi %s884_s12, %s1240_s12   ;;  %s842_s11 = sphi %s882_s11, %s1239_s11  }
   0x8   : > { %s907_s16 = sadd.s32 1, %s854_s14   ;;  %s47_s17 = sadd.s32 1, %s850_s13 }
   0x9   : > { %s44_s18 = ssub.s32 %s854_s14, %s907_s16  ;;  %p54_p0 = scmp.ne.s32.totalorder %s850_s13, %s846_s12 }
   0xa   : > { %p45_p1 = scmp.eq.s32.totalorder %s44_s18, 0  ;;  %p55_p2 = scmp.eq.s32.totalorder %s854_s14, 0 }
   0xb   : > { %p60_p3 = scmp.ne.s32.totalorder %s846_s12, %s842_s11  ;;  %p61_p4 = scmp.eq.s32.totalorder %s903_s0, 0 }
   0xc   : > { %s919_s19 = scalar_select %p45_p1, %s850_s13, %s47_s17  }
   0xd   : > { %p56_p5 = por %p55_p2, %p54_p0  ;;  %p921_p6 = por %p61_p4, %p60_p3 }
   0xe   : > { %p84_p7 = scmp.eq.s32.totalorder %s903_s0, 1  ;;  %p90_p8 = scmp.eq.s32.totalorder %s678_s15, 1 }
   0xf   : > { %p680_p9 = scmp.ge.s32.totalorder %s854_s14, 2  ;;  %p704_p10 = scmp.lt.s32.totalorder %s854_s14, 2 }
  0x10   : > { %p928_p11 = por %p84_p7, %p54_p0  ;;  %p932_p12 = por %p90_p8, %p60_p3 }
  0x11   : > { %s113_s23 = sand.u32 1, %s850_s13   ;;  %s689_s24 = smul.u32 48, %s854_s14 }
  0x12   : > { %s688_s25 = smul.u32 48, %s113_s23  ;;  %p941_p13 = pnand %p704_p10, %p56_p5 }
  0x13   : > { %s122_s28 = scalar_lea.hbm %s1233_s1, %s689_s24  ;;  %s114_s5 = scalar_lea.sflag [#allocation5], %s113_s23 }
  0x14   : > { %s123_s30 = sshll.u32 %s122_s28, 4  ;;  %s117_s3 = scalar_lea.vmem [#allocation4], %s688_s25  ;;  %s124_s30 = int_to_ptr.hbm [resolvable:$true] %s123_s30 }
  0x15   : > { %s125_s4 = sshll.u32 %s117_s3, 4  ;;  %s758_s6 = sshra.s32 %s124_s30, 4  ;;  %s126_s4 = int_to_ptr.vmem [resolvable:$true] %s125_s4  ;;  %s759_s6 = int_to_ptr.hbm [resolvable:$true] %s758_s6 }
  0x16   : > { %s760_s7 = scalar_lea.hbm %s759_s6, 48  ;;  %p762_p1 = pneg %p941_p13 }
  0x17   : > { %p761_p0 = scmp.ne.s32.totalorder %s759_s6, %s760_s7  ;;  %s765_s10 = scalar_lea.hbm %s1233_s1, 96 }
  0x18   : > { %p766_p4 = scmp.lt.s32.totalorder %s759_s6, %s1233_s1  ;;  %p767_p5 = scmp.lt.s32.totalorder %s765_s10, %s760_s7 }
  0x19   : > { %p763_p2 = pnand %p762_p1, %p761_p0 }
  0x1a   : > { %p768_p7 = por %p767_p5, %p766_p4 }
  0x1b   : > { %p764_p3 = pneg %p763_p2 }
  0x1d   : > { %p769_p8 = pnand %p768_p7, %p764_p3 }
  0x1f   : > { %772 = shalt.err (!%p769_p8)
}
  0x20   : > { %s856_s18 = smov 128   ;;  %s857_s23 = smov 8  }
  0x21   : > { %699 = dma.hbm_to_vmem [thread:$0]  (!%p941_p13), %s124_s30, 768, %s126_s4, %s114_s5, %s856_s18, %s856_s18, %s857_s23  }
  0x22   : > { %p682_p10 = scmp.ge.s32.totalorder %s854_s14, 1  ;;  %p133_p0 = scmp.lt.s32.totalorder %s854_s14, 3 }
  0x24   : > { %p134_p1 = pnand %p682_p10, %p133_p0 }
  0x25   : > { %s958_s24 = sand.u32 (!%p134_p1), 1, %s846_s12  }
  0x26   : > { %137 = sbr.rel (%p134_p1) target bundleno = 417 (0x1a1), region = 28  ;;  %s140_s26 = scalar_lea.sflag (!%p134_p1), [#allocation5], %s958_s24 }
  0x27   : > { %s690_s25 = smul.u32 (!%p134_p1), 48, %s958_s24 }
  0x29   : > { %s962_s27 = scalar_lea.vmem (!%p134_p1), [#allocation4], %s690_s25 }
  0x2b   : > { %833 = dma.done.wait (%p921_p6), %s140_s26, 768  }
  0x2c   : > { %835 = vsyncadd (%p921_p6), %s140_s26, 4294966528  ;;  %s968_s28 = scalar_lea.vmem [#allocation7], %s690_s25  ;;  %p683_p13 = scmp.ge.s32.totalorder %s903_s0, 1 }
  0x2d   : > { %s858_s29 = smov (!%p683_p13), 1   ;;  %s860_s20 = smov (!%p683_p13), 126  }
  0x2e   : > { %168 = sbr.rel (%p683_p13) target bundleno = 386 (0x182), region = 36  ;;  %s861_s30 = smov (!%p683_p13), 127  }
  0x2f   : > { %s1135_s3 = sld [smem:[#allocation3]] (!%p683_p13) }
  0x33   : > { %v972_v0 = vld [vmem:[%s962_s27 + $0x10] sm:$0xff]  ;;  %v975_v1 = vld [vmem:[%s962_s27] sm:$0xff]  ;;  %vm175_vm0 = vcmask 146432   ;;  %v859_v3 = vmov 0.0   ;;  %v984_v4 = vld [vmem:[%s962_s27 + $0x18] sm:$0xff]  ;;  %vm178_vm1 = vcmask 140288  }
  0x34   : > { %196 = vrot.lane.b32.xlu1 %v972_v0, %s858_s29  ;;  %192 = vrot.lane.b32.xlu0 %v975_v1, %s858_s29  ;;  %v980_v2 = vld [vmem:[%s962_s27 + $0x20] sm:$0xff]  ;;  %180 = vst.msk [vmem:[#allocation2 + $0x18] sm:$0xff] %vm175_vm0, %v859_v3  ;;  %v987_v5 = vld [vmem:[%s962_s27 + $0x8] sm:$0xff]  ;;  %vm210_vm2 = vcmask 138248   ;;  %vm256_vm3 = vcmask 1045504   ;;  %vm243_vm4 = vcmask 1046528  }
  0x35   : > { %200 = vrot.lane.b32.xlu2 %v980_v2, %s858_s29  ;;  %181 = vst.msk [vmem:[#allocation2 + $0x20] sm:$0xff] %vm175_vm0, %v859_v3  ;;  %v990_v6 = vld [vmem:[%s962_s27 + $0x28] sm:$0xff]  ;;  %s218_s4 = ssub.f32 1.0, %s1135_s3 }
  0x36   : > { %176 = vst.msk [vmem:[#allocation2] sm:$0xff] %vm175_vm0, %v859_v3 }
  0x37   : > { %177 = vst.msk [vmem:[#allocation2 + $0x8] sm:$0xff] %vm175_vm0, %v859_v3 }
  0x38   : > { %183 = vst.msk [vmem:[#allocation2 + $0x30] sm:$0xff] %vm175_vm0, %v859_v3 }
  0x39   : > { %184 = vst.msk [vmem:[#allocation2 + $0x38] sm:$0xff] %vm175_vm0, %v859_v3 }
  0x3a   : > { %182 = vst.msk [vmem:[#allocation2 + $0x28] sm:$0x3] %vm178_vm1, %v859_v3 }
  0x3b   : > { %179 = vst.msk [vmem:[#allocation2 + $0x10] sm:$0x3] %vm178_vm1, %v859_v3 }
  0x3c   : > { %198 = vrot.lane.b32.xlu1 %v984_v4, %s858_s29  ;;  %194 = vrot.lane.b32.xlu0 %v987_v5, %s858_s29  ;;  %185 = vst.msk [vmem:[#allocation2 + $0x40] sm:$0x3] %vm178_vm1, %v859_v3  ;;  %vm565_vm1 = vcmask 130048  }
  0x3d   : > { %202 = vrot.lane.b32.xlu2 %v990_v6, %s858_s29 }
  0x8f   : > { %v201_v7 = vpop.permute.xlu2 %200 }
  0x90   : > { %215 = vst.msk [vmem:[#allocation2 + $0x31] sm:$0xff] %vm210_vm2, %v201_v7 }
  0x97   : > { %v203_v8 = vpop.permute.xlu2 %202  ;;  %v1012_v19 = vld [vmem:[#allocation2 + $0x30] sm:$0xff] }
  0x98   : > { %216 = vst.msk [vmem:[#allocation2 + $0x39] sm:$0xff] %vm210_vm2, %v203_v8  ;;  %v484_v37 = vrot.slane %v1012_v19, 2 }
  0x9f   : > { %v1028_v27 = vld [vmem:[#allocation2 + $0x40] sm:$0x3]  ;;  %v1035_v29 = vld [vmem:[#allocation2 + $0x38] sm:$0xff] }
  0xa0   : > { %v487_v38 = vrot.slane %v1028_v27, 2  ;;  %v485_v39 = vrot.slane %v1035_v29, 2 }
  0xa2   : > { %v488_v42 = vsel %vm256_vm3, %v485_v39, %v487_v38  ;;  %v486_v43 = vsel %vm256_vm3, %v484_v37, %v485_v39 }
  0xa3   : > { %v1065_v44 = vsub.f32 %v1035_v29, %v488_v42  ;;  %v1068_v45 = vsub.f32 %v1012_v19, %v486_v43 }
  0xa5   : > { %v493_v46 = vmul.f32 2.0, %v1068_v45  ;;  %v494_v47 = vmul.f32 2.0, %v1065_v44 }
  0xa6   : > { %v197_v9 = vpop.permute.xlu1 %196  ;;  %v193_v10 = vpop.permute.xlu0 %192 }
  0xa7   : > { %213 = vst.msk [vmem:[#allocation2 + $0x19] sm:$0xff] %vm210_vm2, %v197_v9 }
  0xa8   : > { %211 = vst.msk [vmem:[#allocation2 + $0x1] sm:$0xff] %vm210_vm2, %v193_v10 }
  0xae   : > { %v199_v11 = vpop.permute.xlu1 %198  ;;  %v195_v12 = vpop.permute.xlu0 %194  ;;  %v999_v14 = vld [vmem:[#allocation2 + $0x18] sm:$0xff] }
  0xaf   : > { %214 = vst.msk [vmem:[#allocation2 + $0x21] sm:$0xff] %vm210_vm2, %v199_v11  ;;  %v995_v13 = vld [vmem:[#allocation2] sm:$0xff]  ;;  %v375_v18 = vrot.slane %v999_v14, 2 }
  0xb0   : > { %212 = vst.msk [vmem:[#allocation2 + $0x9] sm:$0xff] %vm210_vm2, %v195_v12  ;;  %224 = vrot.lane.b32.xlu0 %v995_v13, %s860_s20  ;;  %v266_v24 = vrot.slane %v995_v13, 2 }
  0xb6   : > { %v331_v17 = vld [vmem:[#allocation2 + $0x20] sm:$0xff]  ;;  %v1014_v20 = vld [vmem:[#allocation2 + $0x28] sm:$0x3] }
  0xb7   : > { %v1001_v15 = vld [vmem:[#allocation2 + $0x10] sm:$0x3]  ;;  %v1003_v16 = vld [vmem:[#allocation2 + $0x8] sm:$0xff]  ;;  %v376_v21 = vrot.slane %v331_v17, 2  ;;  %v378_v31 = vrot.slane %v1014_v20, 2 }
  0xb8   : > { %335 = vrot.lane.b32.xlu0 %v999_v14, %s860_s20  ;;  %233 = vrot.lane.b32.xlu2 %v1001_v15, %s860_s20  ;;  %v267_v22 = vrot.slane %v1003_v16, 2  ;;  %v269_v26 = vrot.slane %v1001_v15, 2 }
  0xb9   : > { %226 = vrot.lane.b32.xlu1 %v1003_v16, %s860_s20  ;;  %v377_v23 = vsel %vm256_vm3, %v375_v18, %v376_v21  ;;  %v379_v35 = vsel %vm256_vm3, %v376_v21, %v378_v31 }
  0xba   : > { %v1025_v25 = vsub.f32 %v999_v14, %v377_v23  ;;  %v268_v28 = vsel %vm256_vm3, %v266_v24, %v267_v22  ;;  %v270_v32 = vsel %vm256_vm3, %v267_v22, %v269_v26  ;;  %v1053_v36 = vsub.f32 %v331_v17, %v379_v35 }
  0xbb   : > { %v1040_v30 = vsub.f32 %v995_v13, %v268_v28  ;;  %v1045_v33 = vsub.f32 %v1003_v16, %v270_v32 }
  0xbc   : > { %v384_v40 = vmul.f32 2.0, %v1025_v25  ;;  %v385_v41 = vmul.f32 2.0, %v1053_v36 }
  0xbd   : > { %v275_v34 = vmul.f32 2.0, %v1040_v30  ;;  %v276_v48 = vmul.f32 2.0, %v1045_v33 }
  0xc0   : > { %444 = vrot.lane.b32.xlu0 %v1012_v19, %s860_s20  ;;  %344 = vrot.lane.b32.xlu2 %v1014_v20, %s860_s20 }
  0xc1   : > { %337 = vrot.lane.b32.xlu1 %v331_v17, %s860_s20 }
  0xc8   : > { %398 = vrot.lane.b32.xlu0 %v1025_v25, %s860_s20  ;;  %453 = vrot.lane.b32.xlu2 %v1028_v27, %s860_s20 }
  0xc9   : > { %446 = vrot.lane.b32.xlu1 %v1035_v29, %s860_s20 }
  0xd0   : > { %291 = vrot.lane.b32.xlu2 %v1045_v33, %s860_s20  ;;  %279 = vrot.lane.b32.xlu0 %v275_v34, %s861_s30 }
  0xd1   : > { %289 = vrot.lane.b32.xlu1 %v1040_v30, %s860_s20 }
  0xd8   : > { %388 = vrot.lane.b32.xlu2 %v384_v40, %s861_s30  ;;  %390 = vrot.lane.b32.xlu0 %v385_v41, %s861_s30 }
  0xd9   : > { %400 = vrot.lane.b32.xlu1 %v1053_v36, %s860_s20 }
  0xe0   : > { %497 = vrot.lane.b32.xlu2 %v493_v46, %s861_s30  ;;  %499 = vrot.lane.b32.xlu0 %v494_v47, %s861_s30 }
  0xe1   : > { %281 = vrot.lane.b32.xlu1 %v276_v48, %s861_s30 }
  0xe8   : > { %509 = vrot.lane.b32.xlu2 %v1065_v44, %s860_s20 }
  0xe9   : > { %507 = vrot.lane.b32.xlu1 %v1068_v45, %s860_s20 }
 0x112   : > { %v234_v49 = vpop.permute.xlu2 %233 }
 0x113   : > { %v236_v26 = vsub.f32 %v1001_v15, %v234_v49 }
 0x115   : > { %v239_v46 = vmul.f32 2.0, %v236_v26 }
 0x11a   : > { %v345_v50 = vpop.permute.xlu2 %344 }
 0x11b   : > { %v347_v9 = vsub.f32 %v1014_v20, %v345_v50 }
 0x11d   : > { %v350_v21 = vmul.f32 2.0, %v347_v9 }
 0x11f   : > { %v357_v32 = vrot.slane %v350_v21, 1 }
 0x122   : > { %v225_v51 = vpop.permute.xlu0 %224  ;;  %v454_v52 = vpop.permute.xlu2 %453 }
 0x123   : > { %v230_v61 = vsub.f32 %v995_v13, %v225_v51  ;;  %v456_v34 = vsub.f32 %v1028_v27, %v454_v52  ;;  %v369_v52 = vrot.slane %v347_v9, 2 }
 0x125   : > { %v237_v8 = vmul.f32 2.0, %v230_v61  ;;  %v257_v39 = vrot.slane %v230_v61, 2  ;;  %v459_v47 = vmul.f32 2.0, %v456_v34 }
 0x127   : > { %v244_v18 = vrot.slane %v237_v8, 1 }
 0x12a   : > { %v336_v53 = vpop.permute.xlu0 %335  ;;  %v1081_v59 = vpop.permute.xlu2 %291 }
 0x12b   : > { %v227_v54 = vpop.permute.xlu1 %226  ;;  %v341_v55 = vsub.f32 %v999_v14, %v336_v53 }
 0x12c   : > { %v1079_v57 = vsub.f32 %v1003_v16, %v227_v54  ;;  %v247_v54 = vrot.slane %v239_v46, 1 }
 0x12d   : > { %v348_v62 = vmul.f32 2.0, %v341_v55  ;;  %v366_v24 = vrot.slane %v341_v55, 2 }
 0x12e   : > { %v238_v3 = vmul.f32 2.0, %v1079_v57  ;;  %v258_v28 = vrot.slane %v1079_v57, 2 }
 0x12f   : > { %v354_v10 = vrot.slane %v348_v62, 1 }
 0x130   : > { %v245_v12 = vrot.slane %v238_v3, 1 }
 0x132   : > { %v445_v56 = vpop.permute.xlu0 %444  ;;  %v389_v22 = vpop.permute.xlu2 %388  ;;  %v246_v13 = vsel %vm243_vm4, %v244_v18, %v245_v12  ;;  %v248_v3 = vsel %vm243_vm4, %v245_v12, %v247_v54 }
 0x133   : > { %v338_v58 = vpop.permute.xlu1 %337  ;;  %v394_v20 = vadd.f32 %v389_v22, %v1025_v25  ;;  %v251_v37 = vadd.f32 %v246_v13, %v230_v61  ;;  %v252_v18 = vadd.f32 %v248_v3, %v1079_v57 }
 0x134   : > { %v342_v60 = vsub.f32 %v331_v17, %v338_v58  ;;  %v466_v58 = vrot.slane %v459_v47, 1 }
 0x136   : > { %v349_v63 = vmul.f32 2.0, %v342_v60  ;;  %v367_v17 = vrot.slane %v342_v60, 2 }
 0x138   : > { %v355_v7 = vrot.slane %v349_v63, 1  ;;  %v368_v35 = vsel %vm256_vm3, %v366_v24, %v367_v17  ;;  %v370_v61 = vsel %vm256_vm3, %v367_v17, %v369_v52  ;;  %v260_v17 = vrot.slane %v236_v26, 2 }
 0x13a   : > { %v399_v11 = vpop.permute.xlu0 %398  ;;  %v356_v16 = vsel %vm243_vm4, %v354_v10, %v355_v7  ;;  %v358_v15 = vsel %vm243_vm4, %v355_v7, %v357_v32  ;;  %v498_v8 = vpop.permute.xlu2 %497 }
 0x13b   : > { %v447_v14 = vpop.permute.xlu1 %446  ;;  %v361_v23 = vadd.f32 %v356_v16, %v341_v55  ;;  %v404_v41 = vadd.f32 %v399_v11, %v394_v20  ;;  %v362_v49 = vadd.f32 %v358_v15, %v342_v60 }
 0x13c   : > { %v1092_v31 = vsub.f32 %v1035_v29, %v447_v14  ;;  %v259_v29 = vsel %vm256_vm3, %v257_v39, %v258_v28 }
 0x13d   : > { %v373_v40 = vadd.f32 %v368_v35, %v361_v23  ;;  %v264_v48 = vadd.f32 %v259_v29, %v251_v37  ;;  %v408_v51 = vmul.f32 %v404_v41, %v404_v41  ;;  %v374_v7 = vadd.f32 %v370_v61, %v362_v49 }
 0x13e   : > { %v458_v25 = vmul.f32 2.0, %v1092_v31  ;;  %v261_v23 = vsel %vm256_vm3, %v258_v28, %v260_v17 }
 0x13f   : > { %v406_v50 = vmul.f32 %v373_v40, %v373_v40  ;;  %v297_v62 = vmul.f32 %v264_v48, %v264_v48  ;;  %v265_v57 = vadd.f32 %v261_v23, %v252_v18 }
 0x140   : > { %v464_v55 = vrot.slane %v458_v25, 1 }
 0x141   : > { %v1103_v10 = vadd.f32 %v408_v51, %v406_v50  ;;  %v503_v50 = vadd.f32 %v498_v8, %v1068_v45 }
 0x142   : > { %v280_v38 = vpop.permute.xlu0 %279  ;;  %v467_v14 = vsel %vm243_vm4, %v464_v55, %v466_v58  ;;  %v510_v39 = vpop.permute.xlu2 %509 }
 0x143   : > { %v290_v42 = vpop.permute.xlu1 %289  ;;  %v285_v43 = vadd.f32 %v280_v38, %v1040_v30  ;;  %v450_v30 = vsub.f32 %v1012_v19, %v445_v56  ;;  %v476_v19 = vrot.slane %v1092_v31, 2  ;;  %746 = vrsqrt.f32 %v1103_v10 }
 0x144   : > { %v407_v56 = vmul.f32 %v374_v7, %v374_v7  ;;  %v471_v22 = vadd.f32 %v467_v14, %v1092_v31  ;;  %vm419_vm12 = vcmp.eq.f32.partialorder %v1103_v10, inf  ;;  %vm421_vm14 = vcmp.eq.f32.partialorder %v1103_v10, 0.0 }
 0x145   : > { %v295_v27 = vadd.f32 %v290_v42, %v285_v43  ;;  %v457_v21 = vmul.f32 2.0, %v450_v30  ;;  %v298_v42 = vmul.f32 %v265_v57, %v265_v57  ;;  %v475_v48 = vrot.slane %v450_v30, 2 }
 0x147   : > { %v299_v53 = vmul.f32 %v295_v27, %v295_v27  ;;  %v463_v24 = vrot.slane %v457_v21, 1  ;;  %v477_v51 = vsel %vm256_vm3, %v475_v48, %v476_v19 }
 0x149   : > { %v1106_v9 = vadd.f32 %v299_v53, %v297_v62  ;;  %v465_v38 = vsel %vm243_vm4, %v463_v24, %v464_v55 }
 0x14a   : > { %v391_v63 = vpop.permute.xlu0 %390  ;;  %v470_v15 = vadd.f32 %v465_v38, %v450_v30 }
 0x14b   : > { %v401_v60 = vpop.permute.xlu1 %400  ;;  %v395_v11 = vadd.f32 %v391_v63, %v1053_v36  ;;  %748 = vrsqrt.f32 %v1106_v9  ;;  %v478_v36 = vrot.slane %v456_v34, 2  ;;  %v747_v34 = vpop.eup %746  ;;  %vm310_vm5 = vcmp.eq.f32.partialorder %v1106_v9, inf }
 0x14c   : > { %v413_v43 = vmul.f32 %v747_v34, %v1103_v10  ;;  %v482_v54 = vadd.f32 %v477_v51, %v470_v15  ;;  %vm312_vm13 = vcmp.eq.f32.partialorder %v1106_v9, 0.0 }
 0x14d   : > { %v405_v16 = vadd.f32 %v401_v60, %v395_v11  ;;  %v479_v32 = vsel %vm256_vm3, %v476_v19, %v478_v36 }
 0x14e   : > { %v483_v37 = vadd.f32 %v479_v32, %v471_v22  ;;  %v414_v52 = vmul.f32 %v747_v34, %v413_v43  ;;  %v515_v62 = vmul.f32 %v482_v54, %v482_v54  ;;  %v549_v32 = vstv %s1135_s3 }
 0x14f   : > { %v409_v12 = vmul.f32 %v405_v16, %v405_v16  ;;  %v551_v54 = vmul.f32 %v549_v32, %v987_v5 }
 0x150   : > { %v516_v25 = vmul.f32 %v483_v37, %v483_v37  ;;  %v415_v30 = vmul.f32 0.5, %v414_v52 }
 0x151   : > { %v1114_v13 = vadd.f32 %v409_v12, %v407_v56  ;;  %v749_v40 = vpop.eup %748 }
 0x152   : > { %v500_v20 = vpop.permute.xlu0 %499  ;;  %v416_v14 = vsub.f32 1.5, %v415_v30 }
 0x153   : > { %750 = vrsqrt.f32 %v1114_v13  ;;  %v282_v35 = vpop.permute.xlu1 %281  ;;  %v504_v31 = vadd.f32 %v500_v20, %v1065_v44  ;;  %vm431_vm6 = vcmp.eq.f32.partialorder %v1114_v13, inf  ;;  %vm433_vm7 = vcmp.eq.f32.partialorder %v1114_v13, 0.0 }
 0x154   : > { %v286_v26 = vadd.f32 %v282_v35, %v1045_v33  ;;  %v304_v33 = vmul.f32 %v749_v40, %v1106_v9  ;;  %v417_v17 = vmul.f32 %v747_v34, %v416_v14  ;;  %v554_v14 = vmul.f32 %v549_v32, %v980_v2 }
 0x155   : > { %v514_v41 = vadd.f32 %v510_v39, %v504_v31 }
 0x156   : > { %v296_v28 = vadd.f32 %v1081_v59, %v286_v26  ;;  %v305_v55 = vmul.f32 %v749_v40, %v304_v33  ;;  %v418_v26 = vmul.f32 %v417_v17, %v1103_v10 }
 0x157   : > { %v518_v29 = vmul.f32 %v514_v41, %v514_v41 }
 0x158   : > { %v300_v46 = vmul.f32 %v296_v28, %v296_v28  ;;  %v306_v3 = vmul.f32 0.5, %v305_v55  ;;  %v434_v28 = vand.u32 2147483648, %v1114_v13  ;;  %v422_v55 = vand.u32 2147483648, %v1103_v10 }
 0x159   : > { %v751_v47 = vpop.eup %750  ;;  %v1126_v49 = vadd.f32 %v518_v29, %v516_v25 }
 0x15a   : > { %v425_v44 = vmul.f32 %v751_v47, %v1114_v13  ;;  %v302_v27 = vadd.f32 %v300_v46, %v298_v42  ;;  %v307_v18 = vsub.f32 1.5, %v306_v3 }
 0x15b   : > { %v508_v59 = vpop.permute.xlu1 %507  ;;  %vm540_vm10 = vcmp.eq.f32.partialorder %v1126_v49, inf  ;;  %vm542_vm11 = vcmp.eq.f32.partialorder %v1126_v49, 0.0 }
 0x15c   : > { %v426_v53 = vmul.f32 %v751_v47, %v425_v44  ;;  %752 = vrsqrt.f32 %v302_v27  ;;  %v513_v61 = vadd.f32 %v508_v59, %v503_v50  ;;  %v308_v36 = vmul.f32 %v749_v40, %v307_v18 }
 0x15d   : > { %754 = vrsqrt.f32 %v1126_v49  ;;  %vm322_vm8 = vcmp.eq.f32.partialorder %v302_v27, inf  ;;  %v325_v41 = vand.u32 2147483648, %v302_v27  ;;  %vm324_vm9 = vcmp.eq.f32.partialorder %v302_v27, 0.0 }
 0x15e   : > { %v427_v58 = vmul.f32 0.5, %v426_v53  ;;  %v517_v63 = vmul.f32 %v513_v61, %v513_v61  ;;  %v309_v38 = vmul.f32 %v308_v36, %v1106_v9  ;;  %v553_v44 = vmul.f32 %v549_v32, %v984_v4 }
 0x15f   : > { %v420_v59 = vsel %vm419_vm12, %v1103_v10, %v418_v26  ;;  %v556_v53 = vstv %s218_s4 }
 0x160   : > { %v428_v7 = vsub.f32 1.5, %v427_v58  ;;  %v1131_v11 = vadd.f32 %v517_v63, %v515_v62  ;;  %v555_v58 = vmul.f32 %v549_v32, %v990_v6  ;;  %v423_v30 = vsel %vm421_vm14, %v422_v55, %v420_v59 }
 0x162   : > { %v753_v60 = vpop.eup %752  ;;  %756 = vrsqrt.f32 %v1131_v11  ;;  %v429_v21 = vmul.f32 %v751_v47, %v428_v7  ;;  %v543_v47 = vand.u32 2147483648, %v1126_v49  ;;  %vm528_vm15 = vcmp.eq.f32.partialorder %v1131_v11, inf }
 0x163   : > { %v755_v45 = vpop.eup %754  ;;  %v316_v8 = vmul.f32 %v753_v60, %v302_v27  ;;  %vm530_vm0 = vcmp.eq.f32.partialorder %v1131_v11, 0.0 }
 0x164   : > { %v534_v16 = vmul.f32 %v755_v45, %v1126_v49  ;;  %v430_v23 = vmul.f32 %v429_v21, %v1114_v13 }
 0x165   : > { %v317_v19 = vmul.f32 %v753_v60, %v316_v8  ;;  %v550_v8 = vmul.f32 %v549_v32, %v975_v1 }
 0x166   : > { %v535_v56 = vmul.f32 %v755_v45, %v534_v16  ;;  %v432_v34 = vsel %vm431_vm6, %v1114_v13, %v430_v23  ;;  %v311_v13 = vsel %vm310_vm5, %v1106_v9, %v309_v38 }
 0x167   : > { %v318_v12 = vmul.f32 0.5, %v317_v19  ;;  %v435_v46 = vsel %vm433_vm7, %v434_v28, %v432_v34 }
 0x168   : > { %v536_v22 = vmul.f32 0.5, %v535_v56  ;;  %v757_v20 = vpop.eup %756 }
 0x169   : > { %v319_v24 = vsub.f32 1.5, %v318_v12  ;;  %v522_v37 = vmul.f32 %v757_v20, %v1131_v11 }
 0x16a   : > { %v537_v57 = vsub.f32 1.5, %v536_v22 }
 0x16b   : > { %v320_v35 = vmul.f32 %v753_v60, %v319_v24  ;;  %v523_v40 = vmul.f32 %v757_v20, %v522_v37 }
 0x16c   : > { %v538_v31 = vmul.f32 %v755_v45, %v537_v57  ;;  %v552_v45 = vmul.f32 %v549_v32, %v972_v0 }
 0x16d   : > { %v321_v39 = vmul.f32 %v320_v35, %v302_v27  ;;  %v524_v43 = vmul.f32 0.5, %v523_v40 }
 0x16e   : > { %v539_v42 = vmul.f32 %v538_v31, %v1126_v49 }
 0x16f   : > { %v323_v15 = vsel %vm322_vm8, %v302_v27, %v321_v39  ;;  %v525_v33 = vsub.f32 1.5, %v524_v43  ;;  %v313_v27 = vand.u32 2147483648, %v1106_v9  ;;  %v531_v9 = vand.u32 2147483648, %v1131_v11 }
 0x170   : > { %v326_v25 = vsel %vm324_vm9, %v325_v41, %v323_v15  ;;  %v541_v29 = vsel %vm540_vm10, %v1126_v49, %v539_v42 }
 0x171   : > { %v437_v48 = vadd.f32 %v435_v46, %v326_v25  ;;  %v544_v50 = vsel %vm542_vm11, %v543_v47, %v541_v29  ;;  %v526_v52 = vmul.f32 %v757_v20, %v525_v33  ;;  %v314_v49 = vsel %vm312_vm13, %v313_v27, %v311_v13 }
 0x172   : > { %v436_v5 = vadd.f32 %v423_v30, %v314_v49 }
 0x173   : > { %v546_v51 = vadd.f32 %v544_v50, %v437_v48  ;;  %v527_v61 = vmul.f32 %v526_v52, %v1131_v11 }
 0x175   : > { %v548_v4 = vmul.f32 0.33333334, %v546_v51  ;;  %v529_v63 = vsel %vm528_vm15, %v1131_v11, %v527_v61 }
 0x176   : > { %v532_v6 = vsel %vm530_vm0, %v531_v9, %v529_v63 }
 0x177   : > { %v558_v62 = vmul.f32 %v556_v53, %v548_v4  ;;  %v545_v60 = vadd.f32 %v532_v6, %v436_v5 }
 0x179   : > { %v560_v10 = vadd.f32 %v558_v62, %v551_v54  ;;  %v562_v3 = vadd.f32 %v558_v62, %v553_v44  ;;  %v564_v7 = vadd.f32 %v558_v62, %v555_v58  ;;  %v547_v16 = vmul.f32 0.33333334, %v545_v60 }
 0x17b   : > { %567 = vst.msk [vmem:[%s968_s28 + $0x8] sm:$0xff] %vm565_vm1, %v560_v10  ;;  %v557_v11 = vmul.f32 %v556_v53, %v547_v16 }
 0x17c   : > { %569 = vst.msk [vmem:[%s968_s28 + $0x18] sm:$0xff] %vm565_vm1, %v562_v3 }
 0x17d   : > { %571 = vst.msk [vmem:[%s968_s28 + $0x28] sm:$0xff] %vm565_vm1, %v564_v7  ;;  %v559_v18 = vadd.f32 %v557_v11, %v550_v8  ;;  %v561_v21 = vadd.f32 %v557_v11, %v552_v45  ;;  %v563_v19 = vadd.f32 %v557_v11, %v554_v14 }
 0x17f   : > { %566 = vst.msk [vmem:[%s968_s28] sm:$0xff] %vm565_vm1, %v559_v18 }
 0x180   : > { %568 = vst.msk [vmem:[%s968_s28 + $0x10] sm:$0xff] %vm565_vm1, %v561_v21 }
 0x181   : > { %570 = vst.msk [vmem:[%s968_s28 + $0x20] sm:$0xff] %vm565_vm1, %v563_v19 }
 0x182 PF: > { %p684_p6 = scmp.lt.s32.totalorder %s903_s0, 1 }
 0x184   : > { %575 = sbr.rel (%p684_p6) target bundleno = 400 (0x190), region = 40 }
 0x189   : > { %v576_v0 = vld [vmem:[%s962_s27] sm:$0xff]  ;;  %vm582_vm2 = vcmask 130048   ;;  %v577_v1 = vld [vmem:[%s962_s27 + $0x8] sm:$0xff]  ;;  %v578_v2 = vld [vmem:[%s962_s27 + $0x10] sm:$0xff] }
 0x18a   : > { %583 = vst.msk [vmem:[%s968_s28] sm:$0xff] %vm582_vm2, %v576_v0  ;;  %v579_v56 = vld [vmem:[%s962_s27 + $0x18] sm:$0xff]  ;;  %v580_v12 = vld [vmem:[%s962_s27 + $0x20] sm:$0xff]  ;;  %v581_v17 = vld [vmem:[%s962_s27 + $0x28] sm:$0xff] }
 0x18b   : > { %584 = vst.msk [vmem:[%s968_s28 + $0x8] sm:$0xff] %vm582_vm2, %v577_v1 }
 0x18c   : > { %585 = vst.msk [vmem:[%s968_s28 + $0x10] sm:$0xff] %vm582_vm2, %v578_v2 }
 0x18d   : > { %586 = vst.msk [vmem:[%s968_s28 + $0x18] sm:$0xff] %vm582_vm2, %v579_v56 }
 0x18e   : > { %587 = vst.msk [vmem:[%s968_s28 + $0x20] sm:$0xff] %vm582_vm2, %v580_v12 }
 0x18f   : > { %588 = vst.msk [vmem:[%s968_s28 + $0x28] sm:$0xff] %vm582_vm2, %v581_v17 }
 0x190 PF: > { %s691_s5 = smul.u32 48, %s903_s0  ;;  %s602_s6 = sshll.u32 %s968_s28, 4  ;;  %s603_s6 = int_to_ptr.vmem [resolvable:$true] %s602_s6 }
 0x191   : > { %s590_s15 = scalar_lea.sflag [#allocation6], %s958_s24  ;;  %s808_s0 = scalar_lea.hbm %s1234_s2, 96 }
 0x192   : > { %s601_s9 = scalar_lea.hbm %s1234_s2, %s691_s5 }
 0x193   : > { %s604_s10 = sshll.u32 %s601_s9, 4  ;;  %s605_s10 = int_to_ptr.hbm [resolvable:$true] %s604_s10 }
 0x194   : > { %s802_s17 = sshra.s32 %s605_s10, 4  ;;  %s803_s17 = int_to_ptr.hbm [resolvable:$true] %s802_s17 }
 0x195   : > { %s804_s18 = scalar_lea.hbm %s803_s17, 48  ;;  %p809_p5 = scmp.lt.s32.totalorder %s803_s17, %s1234_s2 }
 0x196   : > { %p805_p2 = scmp.ne.s32.totalorder %s803_s17, %s804_s18  ;;  %p810_p7 = scmp.lt.s32.totalorder %s808_s0, %s804_s18 }
 0x198   : > { %p806_p3 = pnand %p805_p2, %p928_p11  ;;  %p811_p8 = por %p810_p7, %p809_p5 }
 0x19a   : > { %p807_p4 = pneg %p806_p3 }
 0x19c   : > { %p812_p10 = pnand %p811_p8, %p807_p4 }
 0x19e   : > { %815 = shalt.err (!%p812_p10)
}
 0x19f   : > { %s862_s24 = smov 128   ;;  %s863_s28 = smov 8  }
 0x1a0   : > { %694 = dma.vmem_to_hbm [thread:$0]  (%p928_p11), %s603_s6, 768, %s605_s10, %s590_s15, %s862_s24, %s862_s24, %s863_s28  }
 0x1a1 PF: > { %s619_s29 = sand.u32 1, %s842_s11   ;;  %p701_p0 = pnand %p680_p9, %p932_p12 }
 0x1a2   : > { %s620_s20 = scalar_lea.sflag [#allocation6], %s619_s29 }
 0x1a3   : > { %p702_p1 = pneg %p701_p0 }
 0x1a5   : > { %837 = dma.done.wait (%p702_p1), %s620_s20, 768  }
 0x1a6   : > { %839 = vsyncadd (%p702_p1), %s620_s20, 4294966528  ;;  %p16_p13 = scmp.ge.s32.totalorder %s907_s16, 4   ;;  %s1239_s11 = smov %s846_s12 }
 0x1a7   : > { %s1240_s12 = smov %s850_s13  ;;  %s1241_s13 = smov %s919_s19 }
 0x1a8   : > { %s1242_s14 = smov %s907_s16  ;;  %18 = sbr.rel (!%p16_p13) target bundleno = 7 (0x7), region = 83 }
 0x1ad   :  { %626 = vsyncpa [#allocation5], 1 }
 0x1ae   :  { %628 = vsyncpa [#allocation5 + $0x1], 1 }
 0x1af   :  { %629 = vsyncpa [#allocation6], 1 }
 0x1b0   :  { %631 = vsyncpa [#allocation6 + $0x1], 1 }

</bundles_post_ra>
